<compile_context>
chip_gen: v5e
topology: v5e:2x2
jax: 0.10.0
libtpu: 0.0.40
codegen_flags: <defaults>
</compile_context>

<pallas_src>
import functools
import numpy as np

import jax
import jax.numpy as jnp
from jax.experimental import pallas as pl
from jax.experimental.pallas import tpu as pltpu


def _round_up(x, k):
    return (x + k - 1) // k * k


def _mlp_kernel(x_ref, w1_ref, b1_ref, w2_ref, b2_ref, w3_ref, b3_ref,
                o_ref, *, maxvalue, minvalue):
    # Feature-major dataflow: transpose the (tn, d) batch tile so the batch
    # dimension sits on the MXU column / lane axis (fills the 256-wide MXU and
    # makes the (1, tn) output store lane-dense).  The RHS-transposed dot is
    # the standard q @ k.T pattern; the transpose rides the otherwise idle XLU.
    h = jnp.dot(w1_ref[...], x_ref[...].T,
                preferred_element_type=jnp.float32)            # (m, tn)
    h = jnp.maximum(h + b1_ref[...], 0.0)                      # relu
    h = jnp.dot(w2_ref[...], h,
                preferred_element_type=jnp.float32)            # (m2, tn)
    h = jnp.maximum(h + b2_ref[...], 0.0)                      # relu
    # Layer 3 is a 1-row projection: do it as VPU multiply + sublane reduce
    # instead of a (1, m2) @ (m2, tn) matmul, keeping the MXU free.
    z = jnp.sum(h * w3_ref[...], axis=0, keepdims=True) + b3_ref[...]  # (1, tn)
    # sigmoid * (max-min) + min, with exp on EUP and approx reciprocal (EUP slot).
    t = jnp.exp(-z)
    out = (maxvalue - minvalue) * pl.reciprocal(1.0 + t, approx=True) + minvalue
    o_ref[...] = out.astype(o_ref.dtype)                       # (1, tn) lane-dense


def selection_network_forward(x, params, maxvalue, minvalue, *, tn=None):
    """Pallas implementation of selection_network.forward.

    x: (N, d) float32
    params: dict with
        w1 (m, d), b1 (m, 1), w2 (m2, m), b2 (m2, 1), w3 (m2, 1), b3 (1, 1)
    returns: (N,) float32   (matches y.squeeze(1))
    """
    N, d = x.shape
    m = params["w1"].shape[0]
    m2 = params["w2"].shape[0]

    # Batch tile: multiple of 128 (lane-dense output + sublane alignment),
    # large enough to amortize per-step overhead, capped for VMEM safety
    # (v7x has only 64 MiB per TensorCore).
    if tn is None:
        tn = min(2048, _round_up(N, 128))
    tn = _round_up(int(tn), 128)
    tn = min(tn, 131072)

    # Ragged batch: pad instead of asserting divisibility; padded rows are
    # computed and sliced away afterwards (cheap: output is 4 B / row).
    n_pad = _round_up(N, tn)
    if n_pad != N:
        x = jnp.pad(x, ((0, n_pad - N), (0, 0)))
    grid = (n_pad // tn,)

    # Explicit VMEM budget: double-buffered x tile + output tile + resident
    # weights, with margin. Floor at the default scoped limit, cap below
    # v7x's 64 MiB physical VMEM.
    weight_bytes = sum(int(np.prod(params[k].shape)) * 4
                       for k in ("w1", "b1", "w2", "b2", "w3", "b3"))
    est = 2 * tn * d * 4 + 2 * tn * 4 + 2 * weight_bytes + (2 << 20)
    vmem_limit = int(min(max(est, 32 << 20), 48 << 20))

    kernel = functools.partial(_mlp_kernel,
                               maxvalue=float(maxvalue),
                               minvalue=float(minvalue))

    out = pl.pallas_call(
        kernel,
        out_shape=jax.ShapeDtypeStruct((1, n_pad), jnp.float32),
        grid_spec=pltpu.PrefetchScalarGridSpec(
            num_scalar_prefetch=0,
            grid=grid,
            in_specs=[
                pl.BlockSpec((tn, d), lambda i: (i, 0)),    # x tile (pipelined)
                pl.BlockSpec((m, d), lambda i: (0, 0)),     # w1 (resident)
                pl.BlockSpec((m, 1), lambda i: (0, 0)),     # b1
                pl.BlockSpec((m2, m), lambda i: (0, 0)),    # w2
                pl.BlockSpec((m2, 1), lambda i: (0, 0)),    # b2
                pl.BlockSpec((m2, 1), lambda i: (0, 0)),    # w3 (column vector)
                pl.BlockSpec((1, 1), lambda i: (0, 0)),     # b3
            ],
            out_specs=pl.BlockSpec((1, tn), lambda i: (0, i)),  # lane-dense
        ),
        compiler_params=pltpu.CompilerParams(
            dimension_semantics=("parallel",),
            vmem_limit_bytes=vmem_limit),
    )(x, params["w1"], params["b1"], params["w2"], params["b2"],
      params["w3"], params["b3"])

    return out[0, :N]  # squeeze(1) + drop padding


def init_params(key, d, m, maxvalue, minvalue, initial_constant="none"):
    """Deterministic init mimicking torch.nn.Linear (uniform +/- 1/sqrt(fan_in)).

    Weights are stored (out, in) like torch; biases as (out, 1); w3 as (m2, 1).
    """
    m2 = int(round(m / 2))
    keys = jax.random.split(key, 6)

    def lin_init(kw, kb, fan_in, fan_out):
        bound = 1.0 / np.sqrt(fan_in)
        w = jax.random.uniform(kw, (fan_out, fan_in), jnp.float32, -bound, bound)
        b = jax.random.uniform(kb, (fan_out, 1), jnp.float32, -bound, bound)
        return w, b

    w1, b1 = lin_init(keys[0], keys[1], d, m)
    w2, b2 = lin_init(keys[2], keys[3], m, m2)
    w3t, b3 = lin_init(keys[4], keys[5], m2, 1)   # torch shape (1, m2)
    w3 = w3t.T                                    # store as column (m2, 1)

    if initial_constant != "none":
        w3 = jnp.zeros_like(w3)
        b3 = jnp.full_like(
            b3,
            -np.log((maxvalue - initial_constant) / (initial_constant - minvalue)),
        )

    return {"w1": w1, "b1": b1, "w2": w2, "b2": b2, "w3": w3, "b3": b3}


def _reference_forward(x, params, maxvalue, minvalue):
    y = jnp.maximum(x @ params["w1"].T + params["b1"].T, 0.0)
    y = jnp.maximum(y @ params["w2"].T + params["b2"].T, 0.0)
    z = y @ params["w3"] + params["b3"]
    y = jax.nn.sigmoid(z) * (maxvalue - minvalue) + minvalue
    return y[:, 0]


if __name__ == "__main__":
    # Small shapes consistent with the module: batch N=8, d=16, m=32 (m/2=16)
    N, d, m = 8, 16, 32
    maxvalue, minvalue = 2.0, -1.0

    key = jax.random.PRNGKey(0)
    kx, kp = jax.random.split(key)
    x = jax.random.normal(kx, (N, d), jnp.float32)
    params = init_params(kp, d, m, maxvalue, minvalue, initial_constant="none")

    out = selection_network_forward(x, params, maxvalue, minvalue)
    out = jax.block_until_ready(out)

    ref = _reference_forward(x, params, maxvalue, minvalue)
    # Looser tolerance because the kernel uses the EUP approximate reciprocal
    # for the sigmoid denominator (rel err ~1e-4 on a [-1, 2] output range).
    np.testing.assert_allclose(np.asarray(out), np.asarray(ref),
                               rtol=5e-3, atol=5e-3)
    assert out.shape == (N,)
    print("KERNEL_OK")
</pallas_src>

<mosaic_0001>
module attributes {stable_mosaic.version = 11 : i64} {
  func.func @_mlp_kernel(%arg0: i32, %arg1: memref<128x16xf32, #tpu.memory_space<vmem>>, %arg2: memref<32x16xf32, #tpu.memory_space<vmem>>, %arg3: memref<32x1xf32, #tpu.memory_space<vmem>>, %arg4: memref<16x32xf32, #tpu.memory_space<vmem>>, %arg5: memref<16x1xf32, #tpu.memory_space<vmem>>, %arg6: memref<16x1xf32, #tpu.memory_space<vmem>>, %arg7: memref<1x1xf32, #tpu.memory_space<vmem>>, %arg8: memref<1x128xf32, #tpu.memory_space<vmem>>) attributes {dimension_semantics = [#tpu.dimension_semantics<parallel>], iteration_bounds = array<i64: 1>, scalar_prefetch = 0 : i64, scratch_operands = 0 : i64, tpu.core_type = #tpu.core_type<tc>, window_params = [{transform_indices = @transform_0, window_bounds = array<i64: 128, 16>}, {pipeline_mode = #tpu.pipeline_mode<synchronous>, transform_indices = @transform_1, window_bounds = array<i64: 32, 16>}, {pipeline_mode = #tpu.pipeline_mode<synchronous>, transform_indices = @transform_2, window_bounds = array<i64: 32, 1>}, {pipeline_mode = #tpu.pipeline_mode<synchronous>, transform_indices = @transform_3, window_bounds = array<i64: 16, 32>}, {pipeline_mode = #tpu.pipeline_mode<synchronous>, transform_indices = @transform_4, window_bounds = array<i64: 16, 1>}, {pipeline_mode = #tpu.pipeline_mode<synchronous>, transform_indices = @transform_5, window_bounds = array<i64: 16, 1>}, {pipeline_mode = #tpu.pipeline_mode<synchronous>, transform_indices = @transform_6, window_bounds = array<i64: 1, 1>}, {transform_indices = @transform_7, window_bounds = array<i64: 1, 128>}]} {
    %c0 = arith.constant 0 : index
    %c0_0 = arith.constant 0 : index
    %0 = vector.load %arg2[%c0, %c0_0] : memref<32x16xf32, #tpu.memory_space<vmem>>, vector<32x16xf32>
    %c0_1 = arith.constant 0 : index
    %c0_2 = arith.constant 0 : index
    %1 = vector.load %arg1[%c0_1, %c0_2] : memref<128x16xf32, #tpu.memory_space<vmem>>, vector<128x16xf32>
    %2 = tpu.transpose %1, [1, 0] : vector<128x16xf32> -> vector<16x128xf32>
    %cst = arith.constant dense<0.000000e+00> : vector<32x128xf32>
    %3 = tpu.matmul %0, %2, %cst {dimension_numbers = #tpu.dot_dimension_numbers<[1], [0], [0], [1], [0, 0, 1, 1], [], []>} : vector<32x16xf32>, vector<16x128xf32>, vector<32x128xf32> -> vector<32x128xf32>
    %c0_3 = arith.constant 0 : index
    %c0_4 = arith.constant 0 : index
    %4 = vector.load %arg3[%c0_3, %c0_4] : memref<32x1xf32, #tpu.memory_space<vmem>>, vector<32x1xf32>
    %5 = vector.broadcast %4 : vector<32x1xf32> to vector<32x128xf32>
    %6 = arith.addf %3, %5 : vector<32x128xf32>
    %cst_5 = arith.constant 0.000000e+00 : f32
    %7 = vector.broadcast %cst_5 : f32 to vector<32x128xf32>
    %8 = arith.maximumf %6, %7 : vector<32x128xf32>
    %c0_6 = arith.constant 0 : index
    %c0_7 = arith.constant 0 : index
    %9 = vector.load %arg4[%c0_6, %c0_7] : memref<16x32xf32, #tpu.memory_space<vmem>>, vector<16x32xf32>
    %cst_8 = arith.constant dense<0.000000e+00> : vector<16x128xf32>
    %10 = tpu.matmul %9, %8, %cst_8 {dimension_numbers = #tpu.dot_dimension_numbers<[1], [0], [0], [1], [0, 0, 1, 1], [], []>} : vector<16x32xf32>, vector<32x128xf32>, vector<16x128xf32> -> vector<16x128xf32>
    %c0_9 = arith.constant 0 : index
    %c0_10 = arith.constant 0 : index
    %11 = vector.load %arg5[%c0_9, %c0_10] : memref<16x1xf32, #tpu.memory_space<vmem>>, vector<16x1xf32>
    %12 = vector.broadcast %11 : vector<16x1xf32> to vector<16x128xf32>
    %13 = arith.addf %10, %12 : vector<16x128xf32>
    %cst_11 = arith.constant 0.000000e+00 : f32
    %14 = vector.broadcast %cst_11 : f32 to vector<16x128xf32>
    %15 = arith.maximumf %13, %14 : vector<16x128xf32>
    %c0_12 = arith.constant 0 : index
    %c0_13 = arith.constant 0 : index
    %16 = vector.load %arg6[%c0_12, %c0_13] : memref<16x1xf32, #tpu.memory_space<vmem>>, vector<16x1xf32>
    %17 = vector.broadcast %16 : vector<16x1xf32> to vector<16x128xf32>
    %18 = arith.mulf %15, %17 : vector<16x128xf32>
    %cst_14 = arith.constant dense<0.000000e+00> : vector<128xf32>
    %19 = vector.multi_reduction <add>, %18, %cst_14 [0] : vector<16x128xf32> to vector<128xf32>
    %20 = vector.shape_cast %19 : vector<128xf32> to vector<1x128xf32>
    %c0_15 = arith.constant 0 : index
    %c0_16 = arith.constant 0 : index
    %21 = vector.load %arg7[%c0_15, %c0_16] : memref<1x1xf32, #tpu.memory_space<vmem>>, vector<1x1xf32>
    %22 = vector.broadcast %21 : vector<1x1xf32> to vector<1x128xf32>
    %23 = arith.addf %20, %22 : vector<1x128xf32>
    %cst_17 = arith.constant 0.000000e+00 : f32
    %24 = vector.broadcast %cst_17 : f32 to vector<1x128xf32>
    %25 = arith.subf %24, %23 : vector<1x128xf32>
    %26 = math.exp %25 : vector<1x128xf32>
    %cst_18 = arith.constant 1.000000e+00 : f32
    %27 = vector.broadcast %cst_18 : f32 to vector<1x128xf32>
    %28 = arith.addf %27, %26 : vector<1x128xf32>
    %29 = tpu.reciprocal %28 {approx = true} : vector<1x128xf32> -> vector<1x128xf32>
    %cst_19 = arith.constant 3.000000e+00 : f32
    %30 = vector.broadcast %cst_19 : f32 to vector<1x128xf32>
    %31 = arith.mulf %30, %29 : vector<1x128xf32>
    %cst_20 = arith.constant -1.000000e+00 : f32
    %32 = vector.broadcast %cst_20 : f32 to vector<1x128xf32>
    %33 = arith.addf %31, %32 : vector<1x128xf32>
    %c0_21 = arith.constant 0 : index
    %c0_22 = arith.constant 0 : index
    %34 = vector.load %arg8[%c0_21, %c0_22] : memref<1x128xf32, #tpu.memory_space<vmem>>, vector<1x128xf32>
    tpu.vector_store %arg8[%c0_21, %c0_22], %33 {strides = array<i32>} : memref<1x128xf32, #tpu.memory_space<vmem>>, vector<1x128xf32>,
    return
  }
  func.func @transform_0(%arg0: i32) -> (i32, i32) {
    %c0_i32 = arith.constant 0 : i32
    %c0_i32_0 = arith.constant 0 : i32
    return %arg0, %c0_i32 : i32, i32
  }
  func.func @transform_1(%arg0: i32) -> (i32, i32) {
    %c0_i32 = arith.constant 0 : i32
    %c0_i32_0 = arith.constant 0 : i32
    %c0_i32_1 = arith.constant 0 : i32
    return %c0_i32, %c0_i32_0 : i32, i32
  }
  func.func @transform_2(%arg0: i32) -> (i32, i32) {
    %c0_i32 = arith.constant 0 : i32
    %c0_i32_0 = arith.constant 0 : i32
    %c0_i32_1 = arith.constant 0 : i32
    return %c0_i32, %c0_i32_0 : i32, i32
  }
  func.func @transform_3(%arg0: i32) -> (i32, i32) {
    %c0_i32 = arith.constant 0 : i32
    %c0_i32_0 = arith.constant 0 : i32
    %c0_i32_1 = arith.constant 0 : i32
    return %c0_i32, %c0_i32_0 : i32, i32
  }
  func.func @transform_4(%arg0: i32) -> (i32, i32) {
    %c0_i32 = arith.constant 0 : i32
    %c0_i32_0 = arith.constant 0 : i32
    %c0_i32_1 = arith.constant 0 : i32
    return %c0_i32, %c0_i32_0 : i32, i32
  }
  func.func @transform_5(%arg0: i32) -> (i32, i32) {
    %c0_i32 = arith.constant 0 : i32
    %c0_i32_0 = arith.constant 0 : i32
    %c0_i32_1 = arith.constant 0 : i32
    return %c0_i32, %c0_i32_0 : i32, i32
  }
  func.func @transform_6(%arg0: i32) -> (i32, i32) {
    %c0_i32 = arith.constant 0 : i32
    %c0_i32_0 = arith.constant 0 : i32
    %c0_i32_1 = arith.constant 0 : i32
    return %c0_i32, %c0_i32_0 : i32, i32
  }
  func.func @transform_7(%arg0: i32) -> (i32, i32) {
    %c0_i32 = arith.constant 0 : i32
    %c0_i32_0 = arith.constant 0 : i32
    return %c0_i32, %arg0 : i32, i32
  }
}

</mosaic_0001>

<bundles_post_ra>
// kernel: tpu_custom_call.1
= control target key start
LH: loop header
LB: loop body
LE: loop exit
PB: predicated region body
PF: predicated region fallthrough
CT: control target
= control target key end

     0   :  { %s545_s0 = inlined_call_operand.vmem [shape: f32[128,16], index: 0, kind: input, shape index: {}]   ;;  %s546_s1 = inlined_call_operand.vmem [shape: f32[32,16], index: 1, kind: input, shape index: {}]   ;;  %s547_s2 = inlined_call_operand.vmem [shape: f32[32,1], index: 2, kind: input, shape index: {}]   ;;  %s548_s3 = inlined_call_operand.vmem [shape: f32[16,32], index: 3, kind: input, shape index: {}]   ;;  %s549_s4 = inlined_call_operand.vmem [shape: f32[16,1], index: 4, kind: input, shape index: {}]   ;;  %s550_s5 = inlined_call_operand.vmem [shape: f32[16,1], index: 5, kind: input, shape index: {}]   ;;  %s551_s6 = inlined_call_operand.<no memory space> [shape: f32[1,1], index: 6, kind: input, shape index: {}]   ;;  %s552_s7 = inlined_call_operand.hbm [shape: f32[1,128], index: 7, kind: output, shape index: {}]  }
   0x1   :  { %v12_v0 = vstv %s551_s6 }
   0x2   :  { %13 = vst [vmem:[#allocation2] sm:$0x1] %v12_v0 }
   0x3   :  { %v48_v1 = vld [vmem:[%s545_s0 + $0x78] sm:$0xff]  ;;  %vm73_vm0 = vcmask 130048   ;;  %v47_v2 = vld [vmem:[%s545_s0 + $0x70] sm:$0xff] }
   0x4   :  { %289 = vmatpush.xpose.msk.msra.mxu3 %vm73_vm0, %v48_v1  ;;  %288 = vmatpush.xpose.msk.msra.mxu2 %vm73_vm0, %v48_v1 }
   0x5   :  { %266 = vmatpush.xpose.msk.msra.mxu0 %vm73_vm0, %v48_v1 }
   0x6   :  { %14 = vsyncpa [#allocation4], 0  ;;  %v46_v3 = vld [vmem:[%s545_s0 + $0x68] sm:$0xff]  ;;  %v45_v4 = vld [vmem:[%s545_s0 + $0x60] sm:$0xff]  ;;  %v355_v13 = vmov 0   ;;  %vm181_vm1 = vcmask 261120  }
   0x7   :  { %v44_v5 = vld [vmem:[%s545_s0 + $0x58] sm:$0xff]  ;;  %v43_v6 = vld [vmem:[%s545_s0 + $0x50] sm:$0xff]  ;;  %v42_v7 = vld [vmem:[%s545_s0 + $0x48] sm:$0xff]  ;;  %322 = vset.pattern.permute.xlu0 %v355_v13  ;;  %323 = vset.pattern.permute.xlu1 %v355_v13  ;;  %s257_s12 = sshll.u32 %s552_s7, 4  ;;  %s258_s12 = int_to_ptr.hbm [resolvable:$true] %s257_s12 }
   0x8   :  { %291 = vmatpush.xpose.msk.msra.mxu3 %vm73_vm0, %v47_v2  ;;  %290 = vmatpush.xpose.msk.msra.mxu2 %vm73_vm0, %v47_v2  ;;  %v41_v8 = vld [vmem:[%s545_s0 + $0x40] sm:$0xff]  ;;  %v40_v9 = vld [vmem:[%s545_s0 + $0x38] sm:$0xff]  ;;  %v50_v11 = vld [vmem:[%s547_s2 + $0x8] sm:$0xff] }
   0x9   :  { %267 = vmatpush.xpose.msk.msra.mxu0 %vm73_vm0, %v47_v2  ;;  %v52_v10 = vld [vmem:[%s547_s2 + $0x18] sm:$0xff]  ;;  %v39_v12 = vld [vmem:[%s545_s0 + $0x30] sm:$0xff]  ;;  %60 = vperm.xlu1 %323, %v50_v11   ;;  %v38_v14 = vld [vmem:[%s545_s0 + $0x28] sm:$0xff] }
   0xa   :  { %70 = vperm.xlu0 %322, %v52_v10   ;;  %324 = vset.pattern.permute.xlu2 %v355_v13  ;;  %v51_v15 = vld [vmem:[%s547_s2 + $0x10] sm:$0xff]  ;;  %v49_v16 = vld [vmem:[%s547_s2] sm:$0xff]  ;;  %v36_v18 = vld [vmem:[%s545_s0 + $0x18] sm:$0xff] }
   0xb   :  { %v37_v17 = vld [vmem:[%s545_s0 + $0x20] sm:$0xff]  ;;  %v214_v20 = vld [vmem:[%s550_s5 + $0x8] sm:$0xff]  ;;  %v35_v21 = vld [vmem:[%s545_s0 + $0x10] sm:$0xff] }
   0xc   :  { %293 = vmatpush.xpose.msk.msra.mxu3 %vm73_vm0, %v46_v3  ;;  %292 = vmatpush.xpose.msk.msra.mxu2 %vm73_vm0, %v46_v3  ;;  %v213_v19 = vld [vmem:[%s550_s5] sm:$0xff]  ;;  %v34_v22 = vld [vmem:[%s545_s0 + $0x8] sm:$0xff]  ;;  %v31_v24 = vld [vmem:[%s546_s1 + $0x10] sm:$0xff] }
   0xd   :  { %268 = vmatpush.xpose.msk.msra.mxu0 %vm73_vm0, %v46_v3  ;;  %v33_v23 = vld [vmem:[%s545_s0] sm:$0xff]  ;;  %v30_v25 = vld [vmem:[%s546_s1 + $0x8] sm:$0xff]  ;;  %v32_v27 = vld [vmem:[%s546_s1 + $0x18] sm:$0xff] }
   0xe   :  { %v29_v26 = vld [vmem:[%s546_s1] sm:$0xff]  ;;  %v170_v32 = vld [vmem:[%s549_s4 + $0x8] sm:$0xff] }
   0xf   :  { %v169_v28 = vld [vmem:[%s549_s4] sm:$0xff]  ;;  %v168_v48 = vld [vmem:[%s548_s3 + $0x8] sm:$0xff] }
  0x10   :  { %295 = vmatpush.xpose.msk.msra.mxu3 %vm73_vm0, %v45_v4  ;;  %294 = vmatpush.xpose.msk.msra.mxu2 %vm73_vm0, %v45_v4  ;;  %v234_v39 = vld [vmem:[#allocation2] sm:$0x1] }
  0x11   :  { %269 = vmatpush.xpose.msk.msra.mxu0 %vm73_vm0, %v45_v4  ;;  %55 = vperm.xlu1 %323, %v49_v16   ;;  %v167_v47 = vld [vmem:[%s548_s3] sm:$0xff]  ;;  %s356_s3 = smov [#allocation3]  }
  0x12   :  { %65 = vperm.xlu0 %322, %v51_v15   ;;  %173 = vperm.xlu2 %324, %v169_v28   ;;  %s255_s9 = sshll.u32 %s356_s3, 4  ;;  %s256_s9 = int_to_ptr.vmem [resolvable:$true] %s255_s9 }
  0x14   :  { %297 = vmatpush.xpose.msk.msra.mxu3 %vm73_vm0, %v44_v5  ;;  %296 = vmatpush.xpose.msk.msra.mxu2 %vm73_vm0, %v44_v5 }
  0x15   :  { %270 = vmatpush.xpose.msk.msra.mxu0 %vm73_vm0, %v44_v5 }
  0x18   :  { %299 = vmatpush.xpose.msk.msra.mxu3 %vm73_vm0, %v43_v6  ;;  %298 = vmatpush.xpose.msk.msra.mxu2 %vm73_vm0, %v43_v6 }
  0x19   :  { %271 = vmatpush.xpose.msk.msra.mxu0 %vm73_vm0, %v43_v6  ;;  %222 = vperm.xlu1 %323, %v214_v20  }
  0x1a   :  { %217 = vperm.xlu0 %322, %v213_v19   ;;  %178 = vperm.xlu2 %324, %v170_v32  }
  0x1c   :  { %301 = vmatpush.xpose.msk.msra.mxu3 %vm73_vm0, %v42_v7  ;;  %300 = vmatpush.xpose.msk.msra.mxu2 %vm73_vm0, %v42_v7 }
  0x1d   :  { %272 = vmatpush.xpose.msk.msra.mxu0 %vm73_vm0, %v42_v7 }
  0x20   :  { %303 = vmatpush.xpose.msk.msra.mxu3 %vm73_vm0, %v41_v8  ;;  %302 = vmatpush.xpose.msk.msra.mxu2 %vm73_vm0, %v41_v8 }
  0x21   :  { %273 = vmatpush.xpose.msk.msra.mxu0 %vm73_vm0, %v41_v8 }
  0x22   :  { %237 = vperm.xlu2 %324, %v234_v39  }
  0x24   :  { %305 = vmatpush.xpose.msk.msra.mxu3 %vm73_vm0, %v40_v9  ;;  %304 = vmatpush.xpose.msk.msra.mxu2 %vm73_vm0, %v40_v9 }
  0x25   :  { %274 = vmatpush.xpose.msk.msra.mxu0 %vm73_vm0, %v40_v9 }
  0x28   :  { %307 = vmatpush.xpose.msk.msra.mxu3 %vm73_vm0, %v39_v12  ;;  %306 = vmatpush.xpose.msk.msra.mxu2 %vm73_vm0, %v39_v12 }
  0x29   :  { %275 = vmatpush.xpose.msk.msra.mxu0 %vm73_vm0, %v39_v12 }
  0x2c   :  { %309 = vmatpush.xpose.msk.msra.mxu3 %vm73_vm0, %v38_v14  ;;  %308 = vmatpush.xpose.msk.msra.mxu2 %vm73_vm0, %v38_v14 }
  0x2d   :  { %276 = vmatpush.xpose.msk.msra.mxu0 %vm73_vm0, %v38_v14 }
  0x30   :  { %311 = vmatpush.xpose.msk.msra.mxu3 %vm73_vm0, %v37_v17  ;;  %310 = vmatpush.xpose.msk.msra.mxu2 %vm73_vm0, %v37_v17 }
  0x31   :  { %277 = vmatpush.xpose.msk.msra.mxu0 %vm73_vm0, %v37_v17 }
  0x34   :  { %313 = vmatpush.xpose.msk.msra.mxu3 %vm73_vm0, %v36_v18  ;;  %312 = vmatpush.xpose.msk.msra.mxu2 %vm73_vm0, %v36_v18 }
  0x35   :  { %278 = vmatpush.xpose.msk.msra.mxu0 %vm73_vm0, %v36_v18 }
  0x38   :  { %315 = vmatpush.xpose.msk.msra.mxu3 %vm73_vm0, %v35_v21  ;;  %314 = vmatpush.xpose.msk.msra.mxu2 %vm73_vm0, %v35_v21 }
  0x39   :  { %279 = vmatpush.xpose.msk.msra.mxu0 %vm73_vm0, %v35_v21 }
  0x3c   :  { %317 = vmatpush.xpose.msk.msra.mxu3 %vm73_vm0, %v34_v22  ;;  %316 = vmatpush.xpose.msk.msra.mxu2 %vm73_vm0, %v34_v22 }
  0x3d   :  { %280 = vmatpush.xpose.msk.msra.mxu0 %vm73_vm0, %v34_v22 }
  0x40   :  { %319 = vmatpush.xpose.msk.msra.mxu3 %vm73_vm0, %v33_v23  ;;  %318 = vmatpush.xpose.msk.msra.mxu2 %vm73_vm0, %v33_v23 }
  0x41   :  { %281 = vmatpush.xpose.msk.msra.mxu0 %vm73_vm0, %v33_v23 }
  0x43   :  { %284 = vmatmul.msk.f32.vlgmr.msra.gmra.mxu3 %vm73_vm0, %v31_v24  ;;  %283 = vmatmul.msk.f32.vlgmr.msra.gmra.mxu2 %vm73_vm0, %v30_v25 }
  0x44   :  { %282 = vmatmul.msk.f32.vlgmr.msra.gmra.mxu0 %vm73_vm0, %v29_v26 }
  0x4b   :  { %285 = vmatmul.msk.f32.gmra.mxu3 %vm73_vm0, %v32_v27 }
  0x6c   :  { %v174_v49 = vpop.permute.xlu2 %173 }
  0x74   :  { %v179_v52 = vpop.permute.xlu2 %178 }
  0x7b   :  { %v61_v31 = vpop.permute.xlu1 %60 }
  0x7c   :  { %v71_v29 = vpop.permute.xlu0 %70  ;;  %v238_v2 = vpop.permute.xlu2 %237 }
  0x7d   :  { %v240_v4 = vperm.slane %v238_v2, 0 }
  0x83   :  { %v56_v42 = vpop.permute.xlu1 %55 }
  0x84   :  { %v66_v33 = vpop.permute.xlu0 %65 }
  0x8b   :  { %v223_v58 = vpop.permute.xlu1 %222 }
  0x8c   :  { %v218_v57 = vpop.permute.xlu0 %217 }
  0xc1   :  { %v151_v38 = vpop.f32.mrf.mxu0 }
  0xc2   :  { %v152_v44 = vadd.f32 %v151_v38, %v56_v42 }
  0xc4   :  { %v163_v46 = vmax.f32 %v152_v44, 0.0 }
  0xc6   :  { %v157_v30 = vpop.f32.mrf.mxu3  ;;  %v154_v34 = vpop.f32.mrf.mxu2 }
  0xc7   :  { %v158_v36 = vadd.f32 %v157_v30, %v66_v33  ;;  %v155_v40 = vadd.f32 %v154_v34, %v61_v31 }
  0xc9   :  { %v165_v43 = vmax.f32 %v158_v36, 0.0  ;;  %v164_v45 = vmax.f32 %v155_v40, 0.0 }
  0xce   :  { %v160_v35 = vpop.f32.mrf.mxu3 }
  0xcf   :  { %v161_v37 = vadd.f32 %v160_v35, %v71_v29 }
  0xd1   :  { %v166_v41 = vmax.f32 %v161_v37, 0.0 }
  0xd3   :  { %200 = vmatpush.msra.mxu1 %v166_v41 }
  0xd5   :  { %201 = vmatpush.msra.mxu1 %v165_v43 }
  0xd7   :  { %202 = vmatpush.msra.mxu1 %v164_v45 }
  0xd9   :  { %203 = vmatpush.msra.mxu1 %v163_v46 }
  0xda   :  { %286 = vmatmul.msk.f32.vlgmr.msra.gmra.mxu1 %vm181_vm1, %v167_v47 }
  0xe2   :  { %287 = vmatmul.msk.f32.gmra.mxu1 %vm181_vm1, %v168_v48 }
 0x157   :  { %v205_v50 = vpop.f32.mrf.mxu1 }
 0x158   :  { %v206_v51 = vadd.f32 %v205_v50, %v174_v49 }
 0x15a   :  { %v211_v54 = vmax.f32 %v206_v51, 0.0 }
 0x15c   :  { %v225_v59 = vmul.f32 %v218_v57, %v211_v54 }
 0x15f   :  { %v208_v53 = vpop.f32.mrf.mxu1 }
 0x160   :  { %v209_v55 = vadd.f32 %v208_v53, %v179_v52 }
 0x162   :  { %v212_v56 = vmax.f32 %v209_v55, 0.0 }
 0x164   :  { %v226_v60 = vmul.f32 %v223_v58, %v212_v56 }
 0x166   :  { %v227_v61 = vadd.f32 %v226_v60, %v225_v59 }
 0x168   :  { %v228_v62 = vrot.slane %v227_v61, 4 }
 0x16a   :  { %v229_v63 = vadd.f32 %v228_v62, %v227_v61 }
 0x16c   :  { %v230_v0 = vrot.slane %v229_v63, 2 }
 0x16e   :  { %v231_v1 = vadd.f32 %v230_v0, %v229_v63 }
 0x170   :  { %v232_v3 = vrot.slane %v231_v1, 1 }
 0x172   :  { %v233_v5 = vadd.f32 %v232_v3, %v231_v1 }
 0x174   :  { %v241_v6 = vadd.f32 %v240_v4, %v233_v5 }
 0x176   :  { %v242_v7 = vsub.f32 0.0, %v241_v6 }
 0x178   :  { %v243_v8 = vmul.f32 1.442695, %v242_v7 }
 0x17a   :  { %325 = vpow2.f32 %v243_v8 }
 0x180   :  { %v326_v9 = vpop.eup %325 }
 0x181   :  { %v245_v10 = vadd.f32 1.0, %v326_v9 }
 0x183   :  { %327 = vrcp.f32 %v245_v10 }
 0x189   :  { %v328_v11 = vpop.eup %327 }
 0x18a   :  { %v247_v12 = vmul.f32 3.0, %v328_v11 }
 0x18c   :  { %v248_v13 = vadd.f32 -1.0, %v247_v12 }
 0x18e   :  { %249 = vst [vmem:[#allocation3] sm:$0x1] %v248_v13 }
 0x18f   :  { %260 = dma.vmem_to_hbm [thread:$0]  %s256_s9, 16, %s258_s12, [#allocation4]  }
 0x190   :  { %353 = dma.done.wait [#allocation4], 16  }
 0x191   :  { %354 = vsyncadd [#allocation4], 4294967280 }
 0x192   :  { %265 = vsyncpa [#allocation4], 1 }

</bundles_post_ra>
